<compile_context>
chip_gen: v6e
topology: v6e:2x2x1
jax: 0.10.0
libtpu: 0.0.40
codegen_flags: <defaults>
</compile_context>

<pallas_src>
import functools

import jax
import jax.numpy as jnp
from jax import lax
from jax.experimental import pallas as pl
from jax.experimental.pallas import tpu as pltpu


def _ce_kernel(logits_ref, tgt_ref, out_ref, acc_ref, *, num_classes):
    # grid = (N, hc, row_tiles); axis 2 is the reduction axis over row tiles.
    r = pl.program_id(2)

    @pl.when(r == 0)
    def _():
        acc_ref[...] = jnp.zeros_like(acc_ref)

    t = tgt_ref[0]                                        # (tile_r, L) int32

    if num_classes >= 64:
        # Large-C: visible loop with moderate unroll (no bundle explosion).
        def max_body(c, m):
            return jnp.maximum(m, logits_ref[0, c, :, :])

        m = lax.fori_loop(1, num_classes, max_body,
                          logits_ref[0, 0, :, :], unroll=8)
        m = m.astype(jnp.float32)

        zeros = jnp.zeros(t.shape, jnp.float32)

        def sum_body(c, carry):
            sexp, tl = carry
            xc = logits_ref[0, c, :, :].astype(jnp.float32)
            sexp = sexp + jnp.exp(xc - m)
            tl = tl + jnp.where(t == c, xc, 0.0)
            return sexp, tl

        sexp, tgt_logit = lax.fori_loop(0, num_classes, sum_body,
                                        (zeros, zeros), unroll=8)
    else:
        # Pass 1: running max over the class axis, in the *input* dtype
        # (bf16 on v6e/v7x halves VALU work); cast once afterwards.
        m = logits_ref[0, 0, :, :]
        for c in range(1, num_classes):
            m = jnp.maximum(m, logits_ref[0, c, :, :])
        m = m.astype(jnp.float32)

        # Pass 2: exp-sum and target-logit gather (one-hot compare), f32.
        sexp = jnp.zeros(t.shape, jnp.float32)
        tgt_logit = jnp.zeros(t.shape, jnp.float32)
        for c in range(num_classes):
            xc = logits_ref[0, c, :, :].astype(jnp.float32)
            sexp = sexp + jnp.exp(xc - m)
            tgt_logit = tgt_logit + jnp.where(t == c, xc, 0.0)

    lse = jnp.log(sexp) + m                               # (tile_r, L)
    acc_ref[...] += lse - tgt_logit                       # per-pixel loss

    # Final row-tile for this (image, chunk): single full reduction of the
    # vector accumulator into its partial-sum slot.
    @pl.when(r == pl.num_programs(2) - 1)
    def _():
        out_ref[...] = jnp.sum(acc_ref[...]).reshape(1, 1, 1, 1)


def _tpu_vmem_capacity_bytes():
    try:
        return int(pltpu.get_tpu_info().vmem_capacity_bytes)
    except Exception:
        return 128 * 1024 * 1024  # v5e/v6e default if query unavailable


def _pick_lane_dim(hw):
    """Largest multiple of 128 (<= 1024) dividing H*W, or None."""
    for cand in range(1024, 0, -128):
        if hw % cand == 0:
            return cand
    return None


def _pick_tile_r(R, C, L, itemsize, budget_bytes):
    """Largest tile_r dividing R with tile_r == R or tile_r % 8 == 0 whose
    logits block (C * tile_r * L * itemsize bytes) fits the budget."""
    candidates = [tr for tr in range(R, 0, -1)
                  if R % tr == 0 and (tr == R or tr % 8 == 0)]
    for tr in candidates:
        if C * tr * L * itemsize <= budget_bytes:
            return tr
    return candidates[-1]  # nothing fits: smallest legal tile, raise vmem cap


def cross_entropy_loss_2d(logits_nchw, targets_nhw, *,
                          logits_block_budget_bytes=None):
    """Mean cross-entropy over all pixels (PyTorch CrossEntropyLoss default).

    Callers may pass bf16 logits for ~2x HBM bandwidth; the kernel upcasts
    to f32 for exp/sum so accuracy of the logsumexp is preserved.
    """
    N, C, H, W = logits_nchw.shape
    targets = targets_nhw.astype(jnp.int32)

    # Generation-aware budgets: v7x has only 64 MiB VMEM per TensorCore.
    vmem_cap = _tpu_vmem_capacity_bytes()
    small_vmem = vmem_cap <= 64 * 1024 * 1024
    if logits_block_budget_bytes is None:
        logits_block_budget_bytes = (8 if small_vmem else 16) * 1024 * 1024
    vmem_ceiling = (48 if small_vmem else 100) * 1024 * 1024

    # Lane-dense view: flatten H*W onto a 128-multiple lane axis when possible
    # (free reshape: H, W are contiguous in NCHW).  Otherwise keep (H, W).
    HW = H * W
    L = _pick_lane_dim(HW)
    if L is None:
        R, L = H, W
    else:
        R = HW // L
    logits = logits_nchw.reshape(N, C, R, L)
    tgt = targets.reshape(N, R, L)

    itemsize = jnp.dtype(logits.dtype).itemsize
    tile_r = _pick_tile_r(R, C, L, itemsize, logits_block_budget_bytes)
    n_tiles = R // tile_r

    # Megacore: when N == 1, split the row tiles into a second parallel axis
    # so v7x's two TensorCores both get work (harmless on v5e/v6e).
    hc = 2 if (N == 1 and n_tiles >= 2 and n_tiles % 2 == 0) else 1
    inner = n_tiles // hc
    grid = (N, hc, inner)

    # VMEM limit from actual block sizes (2x double-buffered inputs + scratch).
    blk_logits = C * tile_r * L * itemsize
    blk_tgt = tile_r * L * 4
    need = 2 * blk_logits + 2 * blk_tgt + tile_r * L * 4 + (2 << 20)
    vmem_limit = int(min(vmem_ceiling, max(32 * 1024 * 1024, need)))

    cost = pl.CostEstimate(
        flops=8 * N * H * W * C,
        transcendentals=N * H * W * (C + 1),
        bytes_accessed=N * C * H * W * itemsize + N * H * W * 4 + N * hc * 4,
    )

    kernel = functools.partial(_ce_kernel, num_classes=C)

    partial_sums = pl.pallas_call(
        kernel,
        out_shape=jax.ShapeDtypeStruct((N, hc, 1, 1), jnp.float32),
        grid_spec=pltpu.PrefetchScalarGridSpec(
            num_scalar_prefetch=0,
            grid=grid,
            in_specs=[
                # logits, (N, C, R, L): class axis leading, (tile_r, L) on
                # sublane/lane -- class reductions are elementwise slab ops.
                pl.BlockSpec((1, C, tile_r, L),
                             lambda n, h, r: (n, 0, h * inner + r, 0)),
                # targets, (N, R, L)
                pl.BlockSpec((1, tile_r, L),
                             lambda n, h, r: (n, h * inner + r, 0)),
            ],
            # one partial-sum slot per (image, chunk); both leading axes parallel
            out_specs=pl.BlockSpec((1, 1, 1, 1),
                                   lambda n, h, r: (n, h, 0, 0)),
            scratch_shapes=[pltpu.VMEM((tile_r, L), jnp.float32)],
        ),
        compiler_params=pltpu.CompilerParams(
            dimension_semantics=("parallel", "parallel", "arbitrary"),
            vmem_limit_bytes=vmem_limit,
        ),
        cost_estimate=cost,
    )(logits, tgt)

    return jnp.sum(partial_sums) / (N * H * W)


def _reference_loss(logits_nchw, targets_nhw):
    # pure-JAX reference for sanity checking
    x = jnp.transpose(logits_nchw, (0, 2, 3, 1)).astype(jnp.float32)  # NHWC
    logp = jax.nn.log_softmax(x, axis=-1)
    t = targets_nhw.astype(jnp.int32)
    nll = -jnp.take_along_axis(logp, t[..., None], axis=-1)[..., 0]
    return jnp.mean(nll)


if __name__ == "__main__":
    key = jax.random.PRNGKey(0)
    k1, k2 = jax.random.split(key)

    N, C, H, W = 2, 4, 16, 16
    logits = jax.random.normal(k1, (N, C, H, W), dtype=jnp.float32)
    targets = jax.random.randint(k2, (N, H, W), 0, C, dtype=jnp.int32)

    loss = jax.block_until_ready(cross_entropy_loss_2d(logits, targets))
    ref = jax.block_until_ready(_reference_loss(logits, targets))
    assert jnp.allclose(loss, ref, rtol=1e-5, atol=1e-5), (loss, ref)

    # bf16 logits path (caller-side bandwidth optimization): looser tolerance
    # since the inputs themselves are rounded to bf16.
    loss_bf16 = jax.block_until_ready(
        cross_entropy_loss_2d(logits.astype(jnp.bfloat16), targets))
    assert jnp.allclose(loss_bf16, ref, rtol=3e-2, atol=3e-2), (loss_bf16, ref)

    print("KERNEL_OK")
</pallas_src>

<mosaic_0001>
module attributes {stable_mosaic.version = 11 : i64} {
  func.func @_ce_kernel(%arg0: i32, %arg1: i32, %arg2: i32, %arg3: memref<1x4x1x256xf32, #tpu.memory_space<vmem>>, %arg4: memref<1x1x256xi32, #tpu.memory_space<vmem>>, %arg5: memref<1x1x1x1xf32, #tpu.memory_space<vmem>>, %arg6: memref<1x256xf32, #tpu.memory_space<vmem>>) attributes {dimension_semantics = [#tpu.dimension_semantics<parallel>, #tpu.dimension_semantics<parallel>, #tpu.dimension_semantics<arbitrary>], iteration_bounds = array<i64: 2, 1, 1>, scalar_prefetch = 0 : i64, scratch_operands = 1 : i64, tpu.core_type = #tpu.core_type<tc>, window_params = [{transform_indices = @transform_0, window_bounds = array<i64: 1, 4, 1, 256>}, {transform_indices = @transform_1, window_bounds = array<i64: 1, 1, 256>}, {transform_indices = @transform_2, window_bounds = array<i64: 1, 1, 1, 1>}]} {
    %c0_i32 = arith.constant 0 : i32
    %0 = arith.cmpi eq, %arg2, %c0_i32 : i32
    %1 = arith.extui %0 : i1 to i32
    %c0_i32_0 = arith.constant 0 : i32
    %2 = arith.cmpi ne, %1, %c0_i32_0 : i32
    scf.if %2 {
      %cst_44 = arith.constant 0.000000e+00 : f32
      %67 = vector.broadcast %cst_44 : f32 to vector<1x256xf32>
      %c0_45 = arith.constant 0 : index
      %c0_46 = arith.constant 0 : index
      %68 = vector.load %arg6[%c0_45, %c0_46] : memref<1x256xf32, #tpu.memory_space<vmem>>, vector<1x256xf32>
      tpu.vector_store %arg6[%c0_45, %c0_46], %67 {strides = array<i32>} : memref<1x256xf32, #tpu.memory_space<vmem>>, vector<1x256xf32>,
    } else {
    }
    %c0 = arith.constant 0 : index
    %c0_1 = arith.constant 0 : index
    %c0_2 = arith.constant 0 : index
    %3 = vector.load %arg4[%c0, %c0_1, %c0_2] : memref<1x1x256xi32, #tpu.memory_space<vmem>>, vector<1x1x256xi32>
    %4 = vector.shape_cast %3 : vector<1x1x256xi32> to vector<1x256xi32>
    %c0_3 = arith.constant 0 : index
    %c0_4 = arith.constant 0 : index
    %c0_5 = arith.constant 0 : index
    %c0_6 = arith.constant 0 : index
    %5 = vector.load %arg3[%c0_3, %c0_4, %c0_5, %c0_6] : memref<1x4x1x256xf32, #tpu.memory_space<vmem>>, vector<1x1x1x256xf32>
    %6 = vector.shape_cast %5 : vector<1x1x1x256xf32> to vector<1x256xf32>
    %c0_7 = arith.constant 0 : index
    %c1 = arith.constant 1 : index
    %c0_8 = arith.constant 0 : index
    %c0_9 = arith.constant 0 : index
    %7 = vector.load %arg3[%c0_7, %c1, %c0_8, %c0_9] : memref<1x4x1x256xf32, #tpu.memory_space<vmem>>, vector<1x1x1x256xf32>
    %8 = vector.shape_cast %7 : vector<1x1x1x256xf32> to vector<1x256xf32>
    %9 = arith.maximumf %6, %8 : vector<1x256xf32>
    %c0_10 = arith.constant 0 : index
    %c2 = arith.constant 2 : index
    %c0_11 = arith.constant 0 : index
    %c0_12 = arith.constant 0 : index
    %10 = vector.load %arg3[%c0_10, %c2, %c0_11, %c0_12] : memref<1x4x1x256xf32, #tpu.memory_space<vmem>>, vector<1x1x1x256xf32>
    %11 = vector.shape_cast %10 : vector<1x1x1x256xf32> to vector<1x256xf32>
    %12 = arith.maximumf %9, %11 : vector<1x256xf32>
    %c0_13 = arith.constant 0 : index
    %c3 = arith.constant 3 : index
    %c0_14 = arith.constant 0 : index
    %c0_15 = arith.constant 0 : index
    %13 = vector.load %arg3[%c0_13, %c3, %c0_14, %c0_15] : memref<1x4x1x256xf32, #tpu.memory_space<vmem>>, vector<1x1x1x256xf32>
    %14 = vector.shape_cast %13 : vector<1x1x1x256xf32> to vector<1x256xf32>
    %15 = arith.maximumf %12, %14 : vector<1x256xf32>
    %cst = arith.constant 0.000000e+00 : f32
    %16 = vector.broadcast %cst : f32 to vector<1x256xf32>
    %cst_16 = arith.constant 0.000000e+00 : f32
    %17 = vector.broadcast %cst_16 : f32 to vector<1x256xf32>
    %c0_17 = arith.constant 0 : index
    %c0_18 = arith.constant 0 : index
    %c0_19 = arith.constant 0 : index
    %c0_20 = arith.constant 0 : index
    %18 = vector.load %arg3[%c0_17, %c0_18, %c0_19, %c0_20] : memref<1x4x1x256xf32, #tpu.memory_space<vmem>>, vector<1x1x1x256xf32>
    %19 = vector.shape_cast %18 : vector<1x1x1x256xf32> to vector<1x256xf32>
    %20 = arith.subf %19, %15 : vector<1x256xf32>
    %21 = math.exp %20 : vector<1x256xf32>
    %22 = arith.addf %16, %21 : vector<1x256xf32>
    %c0_i32_21 = arith.constant 0 : i32
    %23 = vector.broadcast %c0_i32_21 : i32 to vector<1x256xi32>
    %24 = arith.cmpi eq, %4, %23 : vector<1x256xi32>
    %cst_22 = arith.constant 0.000000e+00 : f32
    %25 = vector.broadcast %cst_22 : f32 to vector<1x256xf32>
    %26 = arith.select %24, %19, %25 : vector<1x256xi1>, vector<1x256xf32>
    %27 = arith.addf %17, %26 : vector<1x256xf32>
    %c0_23 = arith.constant 0 : index
    %c1_24 = arith.constant 1 : index
    %c0_25 = arith.constant 0 : index
    %c0_26 = arith.constant 0 : index
    %28 = vector.load %arg3[%c0_23, %c1_24, %c0_25, %c0_26] : memref<1x4x1x256xf32, #tpu.memory_space<vmem>>, vector<1x1x1x256xf32>
    %29 = vector.shape_cast %28 : vector<1x1x1x256xf32> to vector<1x256xf32>
    %30 = arith.subf %29, %15 : vector<1x256xf32>
    %31 = math.exp %30 : vector<1x256xf32>
    %32 = arith.addf %22, %31 : vector<1x256xf32>
    %c1_i32 = arith.constant 1 : i32
    %33 = vector.broadcast %c1_i32 : i32 to vector<1x256xi32>
    %34 = arith.cmpi eq, %4, %33 : vector<1x256xi32>
    %cst_27 = arith.constant 0.000000e+00 : f32
    %35 = vector.broadcast %cst_27 : f32 to vector<1x256xf32>
    %36 = arith.select %34, %29, %35 : vector<1x256xi1>, vector<1x256xf32>
    %37 = arith.addf %27, %36 : vector<1x256xf32>
    %c0_28 = arith.constant 0 : index
    %c2_29 = arith.constant 2 : index
    %c0_30 = arith.constant 0 : index
    %c0_31 = arith.constant 0 : index
    %38 = vector.load %arg3[%c0_28, %c2_29, %c0_30, %c0_31] : memref<1x4x1x256xf32, #tpu.memory_space<vmem>>, vector<1x1x1x256xf32>
    %39 = vector.shape_cast %38 : vector<1x1x1x256xf32> to vector<1x256xf32>
    %40 = arith.subf %39, %15 : vector<1x256xf32>
    %41 = math.exp %40 : vector<1x256xf32>
    %42 = arith.addf %32, %41 : vector<1x256xf32>
    %c2_i32 = arith.constant 2 : i32
    %43 = vector.broadcast %c2_i32 : i32 to vector<1x256xi32>
    %44 = arith.cmpi eq, %4, %43 : vector<1x256xi32>
    %cst_32 = arith.constant 0.000000e+00 : f32
    %45 = vector.broadcast %cst_32 : f32 to vector<1x256xf32>
    %46 = arith.select %44, %39, %45 : vector<1x256xi1>, vector<1x256xf32>
    %47 = arith.addf %37, %46 : vector<1x256xf32>
    %c0_33 = arith.constant 0 : index
    %c3_34 = arith.constant 3 : index
    %c0_35 = arith.constant 0 : index
    %c0_36 = arith.constant 0 : index
    %48 = vector.load %arg3[%c0_33, %c3_34, %c0_35, %c0_36] : memref<1x4x1x256xf32, #tpu.memory_space<vmem>>, vector<1x1x1x256xf32>
    %49 = vector.shape_cast %48 : vector<1x1x1x256xf32> to vector<1x256xf32>
    %50 = arith.subf %49, %15 : vector<1x256xf32>
    %51 = math.exp %50 : vector<1x256xf32>
    %52 = arith.addf %42, %51 : vector<1x256xf32>
    %c3_i32 = arith.constant 3 : i32
    %53 = vector.broadcast %c3_i32 : i32 to vector<1x256xi32>
    %54 = arith.cmpi eq, %4, %53 : vector<1x256xi32>
    %cst_37 = arith.constant 0.000000e+00 : f32
    %55 = vector.broadcast %cst_37 : f32 to vector<1x256xf32>
    %56 = arith.select %54, %49, %55 : vector<1x256xi1>, vector<1x256xf32>
    %57 = arith.addf %47, %56 : vector<1x256xf32>
    %58 = math.log %52 : vector<1x256xf32>
    %59 = arith.addf %58, %15 : vector<1x256xf32>
    %c0_38 = arith.constant 0 : index
    %c0_39 = arith.constant 0 : index
    %60 = vector.load %arg6[%c0_38, %c0_39] : memref<1x256xf32, #tpu.memory_space<vmem>>, vector<1x256xf32>
    %61 = arith.subf %59, %57 : vector<1x256xf32>
    %62 = arith.addf %60, %61 : vector<1x256xf32>
    %c0_40 = arith.constant 0 : index
    %c0_41 = arith.constant 0 : index
    %63 = vector.load %arg6[%c0_40, %c0_41] : memref<1x256xf32, #tpu.memory_space<vmem>>, vector<1x256xf32>
    tpu.vector_store %arg6[%c0_40, %c0_41], %62 {strides = array<i32>} : memref<1x256xf32, #tpu.memory_space<vmem>>, vector<1x256xf32>,
    %c0_i32_42 = arith.constant 0 : i32
    %64 = arith.cmpi eq, %arg2, %c0_i32_42 : i32
    %65 = arith.extui %64 : i1 to i32
    %c0_i32_43 = arith.constant 0 : i32
    %66 = arith.cmpi ne, %65, %c0_i32_43 : i32
    scf.if %66 {
      %c0_44 = arith.constant 0 : index
      %c0_45 = arith.constant 0 : index
      %67 = vector.load %arg6[%c0_44, %c0_45] : memref<1x256xf32, #tpu.memory_space<vmem>>, vector<1x256xf32>
      %68 = vector.shape_cast %67 : vector<1x256xf32> to vector<1x1x256xf32>
      %cst_46 = arith.constant dense<0.000000e+00> : vector<1xf32>
      %69 = vector.multi_reduction <add>, %68, %cst_46 [1, 2] : vector<1x1x256xf32> to vector<1xf32>
      %70 = vector.shape_cast %69 : vector<1xf32> to vector<1x1x1xf32>
      %71 = vector.extract %70[0, 0, 0] : f32 from vector<1x1x1xf32>
      %72 = vector.broadcast %71 : f32 to vector<1x1x1x1xf32>
      %c0_47 = arith.constant 0 : index
      %c0_48 = arith.constant 0 : index
      %c0_49 = arith.constant 0 : index
      %c0_50 = arith.constant 0 : index
      %73 = vector.load %arg5[%c0_47, %c0_48, %c0_49, %c0_50] : memref<1x1x1x1xf32, #tpu.memory_space<vmem>>, vector<1x1x1x1xf32>
      tpu.vector_store %arg5[%c0_47, %c0_48, %c0_49, %c0_50], %72 {strides = array<i32>} : memref<1x1x1x1xf32, #tpu.memory_space<vmem>>, vector<1x1x1x1xf32>,
    } else {
    }
    return
  }
  func.func @transform_0(%arg0: i32, %arg1: i32, %arg2: i32) -> (i32, i32, i32, i32) {
    %c1_i32 = arith.constant 1 : i32
    %0 = arith.muli %arg1, %c1_i32 : i32
    %1 = arith.addi %0, %arg2 : i32
    %c0_i32 = arith.constant 0 : i32
    %c0_i32_0 = arith.constant 0 : i32
    %c0_i32_1 = arith.constant 0 : i32
    return %arg0, %c0_i32, %1, %c0_i32_0 : i32, i32, i32, i32
  }
  func.func @transform_1(%arg0: i32, %arg1: i32, %arg2: i32) -> (i32, i32, i32) {
    %c1_i32 = arith.constant 1 : i32
    %0 = arith.muli %arg1, %c1_i32 : i32
    %1 = arith.addi %0, %arg2 : i32
    %c0_i32 = arith.constant 0 : i32
    %c0_i32_0 = arith.constant 0 : i32
    return %arg0, %1, %c0_i32 : i32, i32, i32
  }
  func.func @transform_2(%arg0: i32, %arg1: i32, %arg2: i32) -> (i32, i32, i32, i32) {
    %c0_i32 = arith.constant 0 : i32
    %c0_i32_0 = arith.constant 0 : i32
    %c0_i32_1 = arith.constant 0 : i32
    return %arg0, %arg1, %c0_i32, %c0_i32_0 : i32, i32, i32, i32
  }
}

</mosaic_0001>

<bundles_post_ra>
// kernel: tpu_custom_call.1
= control target key start
LH: loop header
LB: loop body
LE: loop exit
PB: predicated region body
PF: predicated region fallthrough
CT: control target
= control target key end

     0   :  { %7 = vsyncpa [#allocation4], 0  ;;  %s804_s0 = inlined_call_operand.hbm [shape: f32[2,4,1,256], index: 0, kind: input, shape index: {}]   ;;  %s805_s1 = inlined_call_operand.hbm [shape: s32[2,1,256], index: 1, kind: input, shape index: {}]   ;;  %s806_s2 = inlined_call_operand.vmem [shape: f32[2,1,1,1], index: 2, kind: output, shape index: {}]  }
   0x1   :  { %9 = vsyncpa [#allocation4 + $0x1], 0 }
   0x2   :  { %10 = vsyncpa [#allocation6], 0 }
   0x3   :  { %12 = vsyncpa [#allocation6 + $0x1], 0  ;;  %s669_s9 = smov 0   ;;  %s671_s10 = smov 0  }
   0x4   :  { %s673_s11 = smov 0   ;;  %s675_s12 = smov 0  }
   0x5   :  { %s677_s13 = smov 0   ;;  %s679_s14 = smov 0  }
   0x6 LB: > { %s442_s15 = sadd.s32 4294967295, %s647_s14   ;;  %s37_s16 = sadd.s32 1, %s643_s13  ;;  %s647_s14 = sphi %s679_s14, %s18_s14   ;;  %s643_s13 = sphi %s677_s13, %s817_s13   ;;  %s639_s12 = sphi %s675_s12, %s816_s12   ;;  %s635_s11 = sphi %s673_s11, %s815_s11   ;;  %s631_s10 = sphi %s671_s10, %s814_s10   ;;  %s627_s9 = sphi %s669_s9, %s813_s9  }
   0x7   : > { %p39_p0 = scmp.ge.s32.totalorder %s37_s16, 2  ;;  %s48_s17 = sadd.s32 1, %s635_s11 }
   0x8   : > { %p55_p1 = scmp.ne.s32.totalorder %s635_s11, %s631_s10  ;;  %p56_p2 = scmp.eq.s32.totalorder %s647_s14, 0 }
   0x9   : > { %s819_s16 = smov (%p39_p0, %s37_s16), 0  ;;  %p61_p4 = scmp.ne.s32.totalorder %s631_s10, %s627_s9 }
   0xa   : > { %p705_p3 = por %p56_p2, %p55_p1  ;;  %s43_s19 = ssub.s32 %s643_s13, %s819_s16 }
   0xb   : > { %p62_p5 = scmp.eq.s32.totalorder %s442_s15, 0  ;;  %p46_p6 = scmp.eq.s32.totalorder %s43_s19, 0 }
   0xc   : > { %p475_p8 = scmp.lt.s32.totalorder %s647_s14, 2  ;;  %s721_s22 = sand.u32 1, %s635_s11  }
   0xd   : > { %p712_p7 = por %p62_p5, %p61_p4  ;;  %s460_s23 = sshll.u32 %s643_s13, 7 }
   0xe   : > { %s718_s21 = scalar_select %p46_p6, %s635_s11, %s48_s17  }
   0xf   : > { %s446_s24 = sshll.u32 %s721_s22, 3  ;;  %s156_s27 = scalar_lea.hbm %s804_s0, %s460_s23 }
  0x10   : > { %s147_s28 = scalar_lea.vmem [#allocation3], %s446_s24  ;;  %p730_p9 = pnand %p475_p8, %p705_p3 }
  0x11   : > { %s157_s29 = sshll.u32 %s147_s28, 4  ;;  %s144_s3 = scalar_lea.sflag [#allocation4], %s721_s22  ;;  %s158_s29 = int_to_ptr.vmem [resolvable:$true] %s157_s29 }
  0x12   : > { %p539_p10 = pneg %p730_p9  ;;  %s550_s4 = scalar_lea.vmem %s158_s29, 128 }
  0x13   : > { %p551_p11 = scmp.ne.s32.totalorder %s158_s29, %s550_s4  ;;  %s649_s5 = smov [#allocation3]  }
  0x14   : > { %s555_s6 = sshll.u32 %s649_s5, 4  ;;  %s556_s6 = int_to_ptr.vmem [resolvable:$false] %s555_s6 }
  0x15   : > { %p553_p12 = pnand %p551_p11, %p539_p10  ;;  %s557_s7 = scalar_lea.vmem %s556_s6, 256 }
  0x16   : > { %p558_p0 = scmp.lt.s32.totalorder %s158_s29, %s556_s6  ;;  %p559_p1 = scmp.lt.s32.totalorder %s557_s7, %s550_s4 }
  0x17   : > { %p554_p13 = pneg %p553_p12 }
  0x18   : > { %p560_p2 = por %p559_p1, %p558_p0 }
  0x1a   : > { %p561_p3 = pnand %p560_p2, %p554_p13 }
  0x1c   : > { %564 = shalt.err (!%p561_p3)
}
  0x1d   : > { %s650_s8 = smov 32   ;;  %s651_s9 = smov 2  }
  0x1e   : > { %471 = dma.hbm_to_vmem [thread:$0]  (!%p730_p9), %s156_s27, 128, %s158_s29, %s144_s3, %s650_s8, %s650_s8, %s651_s9  }
  0x1f   : > { %p452_p4 = scmp.ge.s32.totalorder %s647_s14, 1  ;;  %p187_p5 = scmp.lt.s32.totalorder %s647_s14, 3 }
  0x20   : > { %s449_s15 = sshll.u32 %s721_s22, 1  ;;  %s461_s18 = sshll.u32 %s643_s13, 5 }
  0x21   : > { %p745_p6 = pnand %p452_p4, %p187_p5  ;;  %s171_s19 = scalar_lea.vmem [#allocation5], %s449_s15 }
  0x22   : > { %s182_s23 = sshll.u32 %s171_s19, 4  ;;  %s180_s26 = scalar_lea.hbm %s805_s1, %s461_s18  ;;  %s183_s23 = int_to_ptr.vmem [resolvable:$true] %s182_s23 }
  0x23   : > { %s168_s28 = scalar_lea.sflag [#allocation6], %s721_s22  ;;  %s578_s4 = scalar_lea.vmem %s183_s23, 32 }
  0x24   : > { %p579_p8 = scmp.ne.s32.totalorder %s183_s23, %s578_s4  ;;  %s652_s27 = smov [#allocation5]  }
  0x25   : > { %s583_s29 = sshll.u32 %s652_s27, 4  ;;  %s584_s29 = int_to_ptr.vmem [resolvable:$false] %s583_s29 }
  0x26   : > { %p581_p11 = pnand %p579_p8, %p539_p10  ;;  %s585_s3 = scalar_lea.vmem %s584_s29, 64 }
  0x27   : > { %p586_p13 = scmp.lt.s32.totalorder %s183_s23, %s584_s29  ;;  %p587_p0 = scmp.lt.s32.totalorder %s585_s3, %s578_s4 }
  0x28   : > { %p582_p12 = pneg %p581_p11 }
  0x29   : > { %p588_p1 = por %p587_p0, %p586_p13 }
  0x2b   : > { %p589_p2 = pnand %p588_p1, %p582_p12 }
  0x2d   : > { %592 = shalt.err (!%p589_p2)
}
  0x2e   : > { %474 = dma.hbm_to_vmem [thread:$0]  (!%p730_p9), %s180_s26, 32, %s183_s23, %s168_s28  }
  0x2f   : > { %191 = sbr.rel (%p745_p6) target bundleno = 325 (0x145), region = 28  ;;  %s193_s22 = sand.u32 (!%p745_p6), 1, %s631_s10  }
  0x30   : > { %s453_s5 = sshll.u32 (!%p745_p6), %s193_s22, 3  ;;  %s194_s6 = scalar_lea.sflag (!%p745_p6), [#allocation4], %s193_s22 }
  0x31   : > { %s197_s7 = scalar_lea.vmem (!%p745_p6), [#allocation3], %s453_s5 }
  0x34   : > { %618 = dma.done.wait (%p712_p7), %s194_s6, 128  }
  0x35   : > { %620 = vsyncadd (%p712_p7), %s194_s6, 4294967168  ;;  %s454_s8 = sshll.u32 %s193_s22, 1  ;;  %s203_s9 = scalar_lea.sflag [#allocation6], %s193_s22 }
  0x36   : > { %s766_s15 = scalar_lea.vmem [#allocation5], %s454_s8 }
  0x37   : > { %622 = dma.done.wait (%p712_p7), %s203_s9, 32  }
  0x38   : > { %624 = vsyncadd (%p712_p7), %s203_s9, 4294967264  ;;  %v245_v0 = vlaneseq  ;;  %v653_v2 = vmov 0.0   ;;  %v251_v3 = vld [vmem:[%s197_s7] sm:$0x3]  ;;  %v455_v4 = vld [vmem:[%s197_s7 + $0x2] sm:$0x3] }
  0x39   : > { %v254_v5 = vmax.f32 %v251_v3, %v455_v4  ;;  %v456_v6 = vld [vmem:[%s197_s7 + $0x4] sm:$0x3]  ;;  %v457_v7 = vld [vmem:[%s197_s7 + $0x6] sm:$0x3]  ;;  %v250_v24 = vld [vmem:[%s766_s15] sm:$0x3] }
  0x3a   : > { %vm772_vm0 = vcmp.lt.s32.totalorder %v245_v0, 256  ;;  %vm265_vm1 = vcmp.eq.s32.totalorder %v250_v24, 0  ;;  %vm272_vm2 = vcmp.eq.s32.totalorder %v250_v24, 1  ;;  %vm279_vm3 = vcmp.eq.s32.totalorder %v250_v24, 2  ;;  %p235_p7 = scmp.lt.s32.totalorder %s639_s12, 1 }
  0x3b   : > { %249 = vst.msk [vmem:[#allocation2] sm:$0x3] %vm772_vm0, %v653_v2  ;;  %v257_v8 = vmax.f32 %v254_v5, %v456_v6  ;;  %v266_v26 = vsel %vm265_vm1, %v251_v3, 0.0  ;;  %v273_v27 = vsel %vm272_vm2, %v455_v4, 0.0  ;;  %v280_v29 = vsel %vm279_vm3, %v456_v6, 0.0 }
  0x3c   : > { %v274_v28 = vadd.f32 %v273_v27, %v266_v26  ;;  %vm286_vm4 = vcmp.eq.s32.totalorder %v250_v24, 3  ;;  %v306_v39 = vshrl.u32 %v245_v0, 7  ;;  %vm315_vm5 = vcmask 1040384   ;;  %s821_s12 = smov (!%p235_p7, %s639_s12), 1 }
  0x3d   : > { %v260_v9 = vmax.f32 %v257_v8, %v457_v7  ;;  %v287_v31 = vsel %vm286_vm4, %v457_v7, 0.0  ;;  %s240_s17 = scalar_lea.vmem %s806_s2, %s821_s12  ;;  %vm329_vm6 = vcmask 0  }
  0x3e   : > { %v281_v30 = vadd.f32 %v280_v29, %v274_v28  ;;  %v307_v40 = vsub.s32 0, %v306_v39  ;;  %v311_v41 = vsub.s32 1, %v306_v39 }
  0x3f   : > { %v261_v10 = vsub.f32 %v251_v3, %v260_v9  ;;  %v268_v11 = vsub.f32 %v455_v4, %v260_v9  ;;  %v275_v12 = vsub.f32 %v456_v6, %v260_v9  ;;  %v282_v13 = vsub.f32 %v457_v7, %v260_v9 }
  0x40   : > { %v288_v33 = vadd.f32 %v287_v31, %v281_v30 }
  0x41   : > { %v262_v14 = vmul.f32 1.442695, %v261_v10  ;;  %v269_v15 = vmul.f32 1.442695, %v268_v11  ;;  %v276_v16 = vmul.f32 1.442695, %v275_v12 }
  0x42   : > { %v283_v17 = vmul.f32 1.442695, %v282_v13  ;;  %v292_v36 = vld [vmem:[#allocation2] sm:$0x3] }
  0x43   : > { %527 = vpow2.f32 %v262_v14 }
  0x44   : > { %529 = vpow2.f32 %v269_v15 }
  0x45   : > { %531 = vpow2.f32 %v276_v16 }
  0x46   : > { %533 = vpow2.f32 %v283_v17 }
  0x50   : > { %v528_v18 = vpop.eup %527 }
  0x51   : > { %v530_v19 = vpop.eup %529 }
  0x52   : > { %v532_v20 = vpop.eup %531  ;;  %v271_v21 = vadd.f32 %v530_v19, %v528_v18 }
  0x53   : > { %v534_v22 = vpop.eup %533 }
  0x54   : > { %v278_v23 = vadd.f32 %v532_v20, %v271_v21 }
  0x56   : > { %v285_v25 = vadd.f32 %v534_v22, %v278_v23 }
  0x58   : > { %535 = vlog2.f32 %v285_v25 }
  0x65   : > { %v536_v32 = vpop.eup %535 }
  0x66   : > { %v290_v34 = vmul.f32 0.6931472, %v536_v32 }
  0x68   : > { %v291_v35 = vadd.f32 %v290_v34, %v260_v9 }
  0x6a   : > { %v293_v37 = vsub.f32 %v291_v35, %v288_v33 }
  0x6c   : > { %v294_v38 = vadd.f32 %v293_v37, %v292_v36 }
  0x6e   : > { %299 = vst.msk [vmem:[#allocation2] sm:$0x3] %vm772_vm0, %v294_v38 }
  0x75   : > { %v303_v42 = vld [vmem:[#allocation2] sm:$0x3] }
  0x76   : > { %v308_v43 = vrot.slane %v303_v42, %v307_v40  ;;  %v312_v44 = vrot.slane %v303_v42, %v311_v41 }
  0x78   : > { %v316_v45 = vsel %vm315_vm5, %v308_v43, 0.0  ;;  %v317_v46 = vsel %vm315_vm5, %v312_v44, 0.0 }
  0x79   : > { %v318_v47 = vadd.f32 %v317_v46, %v316_v45 }
  0x7b   : > { %319 = vadd.xlane.f32.xlu0 %v318_v47 }
 0x104   : > { %v320_v48 = vpop.xlane.xlu0 %319 }
 0x105   : > { %v321_v49 = vrot.slane %v320_v48, 4 }
 0x107   : > { %v322_v50 = vadd.f32 %v321_v49, %v320_v48 }
 0x109   : > { %v323_v51 = vrot.slane %v322_v50, 2 }
 0x10b   : > { %v324_v52 = vadd.f32 %v323_v51, %v322_v50 }
 0x10d   : > { %v325_v53 = vrot.slane %v324_v52, 1 }
 0x10f   : > { %v326_v54 = vadd.f32 %v325_v53, %v324_v52 }
 0x111   : > { %462 = vpush %v326_v54 }
 0x142   : > { %s463_s18 = spop %462 }
 0x143   : > { %v328_v55 = vstv %s463_s18 }
 0x144   : > { %330 = vst.msk [vmem:[%s240_s17] sm:$0x1] %vm329_vm6, %v328_v55 }
 0x145 PF: > { %s18_s14 = sadd.s32 1, %s647_s14   ;;  %s813_s9 = smov %s631_s10 }
 0x146   : > { %p15_p9 = scmp.ge.s32.totalorder %s18_s14, 4   ;;  %s814_s10 = smov %s635_s11 }
 0x147   : > { %s815_s11 = smov %s718_s21  ;;  %s816_s12 = smov %s643_s13 }
 0x148   : > { %s817_s13 = smov %s819_s16  ;;  %17 = sbr.rel (!%p15_p9) target bundleno = 6 (0x6), region = 92 }
 0x14d   :  { %354 = vsyncpa [#allocation4], 1 }
 0x14e   :  { %356 = vsyncpa [#allocation4 + $0x1], 1 }
 0x14f   :  { %357 = vsyncpa [#allocation6], 1 }
 0x150   :  { %359 = vsyncpa [#allocation6 + $0x1], 1 }

</bundles_post_ra>
